<compile_context>
chip_gen: v6e
topology: v6e:2x2x1
jax: 0.10.0
libtpu: 0.0.40
codegen_flags: <defaults>
</compile_context>

<pallas_src>
import numpy as np
import jax
import jax.numpy as jnp
from jax.experimental import pallas as pl
from jax.experimental.pallas import tpu as pltpu

# ---- config (small, consistent with the module) -------------------------------
HIDDEN_DIM   = 32     # CONTEXT_HIDDEN_DIM
POOLING_DIM  = 64     # CONTEXT_POOLING_DIM
MLP_HEAD_DIM = 48     # ROI_BOX_HEAD.MLP_HEAD_DIM (!= POOLING_DIM -> up_dim branch used)
NUM_OBJ_CLS  = 16     # ROI_BOX_HEAD.NUM_CLASSES
NUM_REL_CLS  = 8      # ROI_RELATION_HEAD.NUM_CLASSES

LANE          = 128   # TPU lane width; every feature dim is packed into one lane tile
MIN_TILE_ROWS = 16    # bf16 sublane packing
MAX_TILE_ROWS = 512   # amortizes per-grid-step overhead at production sizes

# the fused lane-packing scheme assumes every feature dim fits a single 128-lane tile
assert 2 * HIDDEN_DIM + MLP_HEAD_DIM <= LANE, "packed input [2H|M] exceeds one lane tile"
assert 2 * HIDDEN_DIM + POOLING_DIM <= LANE, "packed activations [2H|P] exceed one lane tile"
assert NUM_REL_CLS <= LANE, "relation classes exceed one lane tile"
assert MLP_HEAD_DIM <= LANE and POOLING_DIM <= LANE and HIDDEN_DIM * 2 <= LANE


# ---- Pallas kernel: fused relation-prediction hot path -------------------------
def _vctree_rel_kernel(x_ref,                       # (tile, 128) bf16: [ec_h | ec_t | union]
                       w1_ref, b1_ref,              # fused post_emb(head,tail) + up_dim
                       w2_ref, b2_ref,              # post_cat (output shifted to lanes 2H..)
                       w3_ref, b3_ref,              # ctx_compress
                       out_ref):                    # (tile, 128) bf16, lanes 0..R-1 useful
    f32, bf16 = jnp.float32, jnp.bfloat16

    # stage 1 (one matmul): block-diagonal [W_pe_head | W_pe_tail | W_up]
    #   lanes 0..H-1   = post_emb(ec)[:, :H]     (head, pre-ReLU)
    #   lanes H..2H-1  = post_emb(ec)[:, H:]     (tail, pre-ReLU)
    #   lanes 2H..127  = up_dim(union_features)  (no ReLU)
    y1 = jnp.dot(x_ref[...], w1_ref[...], preferred_element_type=f32) + b1_ref[...]
    lane = jax.lax.broadcasted_iota(jnp.int32, y1.shape, 1)
    y1 = jnp.where(lane < 2 * HIDDEN_DIM, jnp.maximum(y1, 0.0), y1)   # ReLU on head|tail only

    # stage 2: post_cat( cat(head, tail) ); W2 maps rows 0..2H-1 -> lanes 2H..2H+P-1,
    # so 'prod' lands on the same lanes as 'up' -> aligned element-wise multiply.
    prod = jnp.dot(y1.astype(bf16), w2_ref[...], preferred_element_type=f32) + b2_ref[...]
    z = prod * y1        # lanes 2H..2H+P-1 = post_cat * up ; lanes 0..2H-1 = 0

    # stage 3: ctx_compress -> logits in lanes 0..R-1
    out = jnp.dot(z.astype(bf16), w3_ref[...], preferred_element_type=f32) + b3_ref[...]
    out_ref[...] = out.astype(out_ref.dtype)


def _call_rel_kernel(packed, params, tile_rows):
    n_pad = packed.shape[0]
    grid = (n_pad // tile_rows,)

    row_spec = pl.BlockSpec((tile_rows, LANE), lambda i: (i, 0))

    def const_spec(arr):
        # constant block index -> stays VMEM-resident across grid steps (no re-DMA)
        return pl.BlockSpec(arr.shape, lambda i: (0, 0))

    weights = (params["w1"], params["b1"],
               params["w2"], params["b2"],
               params["w3"], params["b3"])

    # right-sized VMEM budget: double-buffered streamed in/out + resident weights + headroom
    stream_bytes = 2 * 2 * tile_rows * LANE * 2            # in + out, 2 buffers each, bf16
    weight_bytes = 3 * LANE * LANE * 2 + 3 * LANE * 4      # bf16 weights + f32 biases
    vmem_limit = int(max(4 << 20, stream_bytes + weight_bytes + (2 << 20)))

    return pl.pallas_call(
        _vctree_rel_kernel,
        grid=grid,
        in_specs=[row_spec] + [const_spec(w) for w in weights],
        out_specs=pl.BlockSpec((tile_rows, LANE), lambda i: (i, 0)),
        out_shape=jax.ShapeDtypeStruct((n_pad, LANE), jnp.bfloat16),
        compiler_params=pltpu.CompilerParams(
            dimension_semantics=("parallel",),      # shard relation tiles across TCs (v7x)
            vmem_limit_bytes=vmem_limit),
    )(packed, *weights)


# ---- deterministic parameter init (mirrors layer_init in __init__) -------------
def init_params(key):
    ks = jax.random.split(key, 5)
    H, P, M, R, C = HIDDEN_DIM, POOLING_DIM, MLP_HEAD_DIM, NUM_REL_CLS, NUM_OBJ_CLS

    def xavier(k, fi, fo):
        std = float(np.sqrt(2.0 / (fi + fo)))
        return std * jax.random.normal(k, (fi, fo), jnp.float32)

    # raw (unpadded, f32, stored as (in, out) so y = x @ W + b) -- for the pure-JAX reference
    raw = {
        "w_pe": (10.0 * (1.0 / H) ** 0.5) * jax.random.normal(ks[0], (H, 2 * H), jnp.float32),
        "b_pe": jnp.zeros((2 * H,), jnp.float32),
        "w_pc": xavier(ks[1], 2 * H, P), "b_pc": jnp.zeros((P,), jnp.float32),
        "w_up": xavier(ks[2], M, P),     "b_up": jnp.zeros((P,), jnp.float32),
        "w_cc": xavier(ks[3], P, R),     "b_cc": jnp.zeros((R,), jnp.float32),
        "freq": 0.1 * jax.random.normal(ks[4], (C * C, R), jnp.float32),
    }

    # --- fused, lane-packed kernel weights ---------------------------------------
    # stage 1: block-diagonal [post_emb head | post_emb tail | up_dim]
    w1 = jnp.zeros((LANE, LANE), jnp.float32)
    w1 = w1.at[0:H, 0:H].set(raw["w_pe"][:, :H])
    w1 = w1.at[H:2 * H, H:2 * H].set(raw["w_pe"][:, H:])
    w1 = w1.at[2 * H:2 * H + M, 2 * H:2 * H + P].set(raw["w_up"])
    b1 = jnp.zeros((1, LANE), jnp.float32)
    b1 = b1.at[0, 0:H].set(raw["b_pe"][:H])
    b1 = b1.at[0, H:2 * H].set(raw["b_pe"][H:])
    b1 = b1.at[0, 2 * H:2 * H + P].set(raw["b_up"])

    # stage 2: post_cat, output columns shifted to lanes 2H..2H+P-1 (aligned with 'up')
    w2 = jnp.zeros((LANE, LANE), jnp.float32).at[0:2 * H, 2 * H:2 * H + P].set(raw["w_pc"])
    b2 = jnp.zeros((1, LANE), jnp.float32).at[0, 2 * H:2 * H + P].set(raw["b_pc"])

    # stage 3: ctx_compress, rows at lanes 2H..2H+P-1 -> logits in lanes 0..R-1
    w3 = jnp.zeros((LANE, LANE), jnp.float32).at[2 * H:2 * H + P, 0:R].set(raw["w_cc"])
    b3 = jnp.zeros((1, LANE), jnp.float32).at[0, 0:R].set(raw["b_cc"])

    params = {
        "w1": w1.astype(jnp.bfloat16), "b1": b1,
        "w2": w2.astype(jnp.bfloat16), "b2": b2,
        "w3": w3.astype(jnp.bfloat16), "b3": b3,
        # FrequencyBias table stays unpadded f32: gathered/added in the wrapper on (n_rel, R)
        "freq": raw["freq"],
    }
    return params, raw


# ---- helpers --------------------------------------------------------------------
def _pick_tile_rows(n_rel):
    # multiple of 16 (bf16 sublane tile), capped at 512; aim for >=2 grid steps so both
    # v7x TensorCores get work (no-op on 1-TC v5e/v6e).
    half = -(-n_rel // 2)
    tile = ((half + MIN_TILE_ROWS - 1) // MIN_TILE_ROWS) * MIN_TILE_ROWS
    return int(min(MAX_TILE_ROWS, max(MIN_TILE_ROWS, tile)))


# ---- forward wrapper (glue: offsets, gathers, packing, freq bias, splits) --------
def vctree_predictor_forward(num_objs, rel_pair_idxs, obj_dists, obj_preds,
                             edge_ctx, union_features, params):
    num_rels = [int(p.shape[0]) for p in rel_pair_idxs]
    assert len(num_rels) == len(num_objs)

    # per-image local pair indices -> global row indices into batch-concatenated edge_ctx
    offsets = np.cumsum([0] + list(num_objs))[:-1]
    global_pairs = jnp.concatenate(
        [p.astype(jnp.int32) + jnp.int32(off) for p, off in zip(rel_pair_idxs, offsets)],
        axis=0)                                                     # (total_rel, 2)
    n_rel = int(global_pairs.shape[0])

    # row gathers hoisted out of the kernel (gather commutes with per-row Linear layers)
    ec_h = edge_ctx[global_pairs[:, 0]]                             # (n_rel, H)
    ec_t = edge_ctx[global_pairs[:, 1]]                             # (n_rel, H)

    # ONE lane-packed streamed operand: [ec_h | ec_t | union] in lanes 0..2H+M-1
    packed = jnp.concatenate([ec_h, ec_t, union_features], axis=-1)  # (n_rel, 2H+M)
    tile_rows = _pick_tile_rows(n_rel)
    n_pad = ((n_rel + tile_rows - 1) // tile_rows) * tile_rows
    packed = jnp.pad(packed, ((0, n_pad - n_rel),
                              (0, LANE - packed.shape[1]))).astype(jnp.bfloat16)

    ctx_all = _call_rel_kernel(packed, params, tile_rows)           # (n_pad, 128) bf16
    # padded rows carry bias-only garbage: slice them off immediately after the call
    ctx_dists = ctx_all[:n_rel, :NUM_REL_CLS].astype(jnp.float32)

    # frequency bias: tiny (n_rel, R) gather + add (no 128-lane f32 stream through the kernel)
    pair_pred = obj_preds[global_pairs]                             # (n_rel, 2)
    freq_idx = pair_pred[:, 0] * NUM_OBJ_CLS + pair_pred[:, 1]
    rel_dists = ctx_dists + params["freq"][freq_idx]

    # split per image (list outputs, as in the torch module)
    obj_splits = np.cumsum(num_objs)[:-1].tolist()
    rel_splits = np.cumsum(num_rels)[:-1].tolist()
    obj_dists_out = jnp.split(obj_dists, obj_splits, axis=0)
    rel_dists_out = jnp.split(rel_dists, rel_splits, axis=0)
    add_losses = {}  # TODO(synk): training-only binary_loss (needs binary_preds from context)
    return obj_dists_out, rel_dists_out, add_losses


# ---- pure-JAX reference (unpadded, f32) for a sanity check -----------------------
def _reference_forward(raw, edge_ctx, global_pairs, obj_preds, union_features):
    H = HIDDEN_DIM
    edge_rep = jnp.maximum(edge_ctx @ raw["w_pe"] + raw["b_pe"], 0.0)
    head, tail = edge_rep[:, :H], edge_rep[:, H:]
    prod = jnp.concatenate([head[global_pairs[:, 0]], tail[global_pairs[:, 1]]], axis=-1)
    prod = prod @ raw["w_pc"] + raw["b_pc"]
    up = union_features @ raw["w_up"] + raw["b_up"]
    ctx = (prod * up) @ raw["w_cc"] + raw["b_cc"]
    pair_pred = obj_preds[global_pairs]
    frq = raw["freq"][pair_pred[:, 0] * NUM_OBJ_CLS + pair_pred[:, 1]]
    return ctx + frq


if __name__ == "__main__":
    key = jax.random.PRNGKey(0)
    k_par, k_ctx, k_dist, k_pred, k_uni, k_p0, k_p1 = jax.random.split(key, 7)

    params, raw = init_params(k_par)

    # two images: 6 and 5 proposals; 18 and 14 relation pairs (=> 2 grid steps of 16 rows)
    num_objs = [6, 5]
    total_obj = sum(num_objs)
    rel_pair_idxs = [
        jax.random.randint(k_p0, (18, 2), 0, num_objs[0], dtype=jnp.int32),
        jax.random.randint(k_p1, (14, 2), 0, num_objs[1], dtype=jnp.int32),
    ]
    total_rel = sum(int(p.shape[0]) for p in rel_pair_idxs)

    # outputs of the (external) VCTreeLSTMContext layer, used as inputs here
    edge_ctx  = jax.random.normal(k_ctx, (total_obj, HIDDEN_DIM), jnp.float32)
    obj_dists = jax.random.normal(k_dist, (total_obj, NUM_OBJ_CLS), jnp.float32)
    obj_preds = jax.random.randint(k_pred, (total_obj,), 0, NUM_OBJ_CLS, dtype=jnp.int32)
    union_features = jax.random.normal(k_uni, (total_rel, MLP_HEAD_DIM), jnp.float32)

    obj_out, rel_out, add_losses = vctree_predictor_forward(
        num_objs, rel_pair_idxs, obj_dists, obj_preds, edge_ctx, union_features, params)

    for r in rel_out:
        jax.block_until_ready(r)
    for o in obj_out:
        jax.block_until_ready(o)

    assert len(rel_out) == 2 and rel_out[0].shape == (18, NUM_REL_CLS) \
        and rel_out[1].shape == (14, NUM_REL_CLS)
    assert len(obj_out) == 2 and obj_out[0].shape == (6, NUM_OBJ_CLS) \
        and obj_out[1].shape == (5, NUM_OBJ_CLS)

    # sanity-check against the pure-JAX f32 reference (loose tolerance: bf16 MXU in/out)
    offsets = np.cumsum([0] + list(num_objs))[:-1]
    gp = jnp.concatenate([p + jnp.int32(off) for p, off in zip(rel_pair_idxs, offsets)], axis=0)
    ref = np.asarray(_reference_forward(raw, edge_ctx, gp, obj_preds, union_features))
    got = np.asarray(jnp.concatenate(rel_out, axis=0))
    rel_err = float(np.max(np.abs(got - ref)) / (np.max(np.abs(ref)) + 1e-6))
    assert np.isfinite(got).all() and rel_err < 5e-2, f"mismatch vs reference: {rel_err}"

    print("KERNEL_OK")
</pallas_src>

<mosaic_0001>
module attributes {stable_mosaic.version = 11 : i64} {
  func.func @_vctree_rel_kernel(%arg0: i32, %arg1: memref<16x128xbf16, #tpu.memory_space<vmem>>, %arg2: memref<128x128xbf16, #tpu.memory_space<vmem>>, %arg3: memref<1x128xf32, #tpu.memory_space<vmem>>, %arg4: memref<128x128xbf16, #tpu.memory_space<vmem>>, %arg5: memref<1x128xf32, #tpu.memory_space<vmem>>, %arg6: memref<128x128xbf16, #tpu.memory_space<vmem>>, %arg7: memref<1x128xf32, #tpu.memory_space<vmem>>, %arg8: memref<16x128xbf16, #tpu.memory_space<vmem>>) attributes {dimension_semantics = [#tpu.dimension_semantics<parallel>], iteration_bounds = array<i64: 2>, scalar_prefetch = 0 : i64, scratch_operands = 0 : i64, tpu.core_type = #tpu.core_type<tc>, window_params = [{transform_indices = @transform_0, window_bounds = array<i64: 16, 128>}, {pipeline_mode = #tpu.pipeline_mode<synchronous>, transform_indices = @transform_1, window_bounds = array<i64: 128, 128>}, {pipeline_mode = #tpu.pipeline_mode<synchronous>, transform_indices = @transform_2, window_bounds = array<i64: 1, 128>}, {pipeline_mode = #tpu.pipeline_mode<synchronous>, transform_indices = @transform_3, window_bounds = array<i64: 128, 128>}, {pipeline_mode = #tpu.pipeline_mode<synchronous>, transform_indices = @transform_4, window_bounds = array<i64: 1, 128>}, {pipeline_mode = #tpu.pipeline_mode<synchronous>, transform_indices = @transform_5, window_bounds = array<i64: 128, 128>}, {pipeline_mode = #tpu.pipeline_mode<synchronous>, transform_indices = @transform_6, window_bounds = array<i64: 1, 128>}, {transform_indices = @transform_7, window_bounds = array<i64: 16, 128>}]} {
    %c0 = arith.constant 0 : index
    %c0_0 = arith.constant 0 : index
    %0 = vector.load %arg1[%c0, %c0_0] : memref<16x128xbf16, #tpu.memory_space<vmem>>, vector<16x128xbf16>
    %c0_1 = arith.constant 0 : index
    %c0_2 = arith.constant 0 : index
    %1 = vector.load %arg2[%c0_1, %c0_2] : memref<128x128xbf16, #tpu.memory_space<vmem>>, vector<128x128xbf16>
    %cst = arith.constant dense<0.000000e+00> : vector<16x128xf32>
    %2 = tpu.matmul %0, %1, %cst {dimension_numbers = #tpu.dot_dimension_numbers<[1], [0], [0], [1], [0, 0, 1, 1], [], []>} : vector<16x128xbf16>, vector<128x128xbf16>, vector<16x128xf32> -> vector<16x128xf32>
    %c0_3 = arith.constant 0 : index
    %c0_4 = arith.constant 0 : index
    %3 = vector.load %arg3[%c0_3, %c0_4] : memref<1x128xf32, #tpu.memory_space<vmem>>, vector<1x128xf32>
    %4 = vector.broadcast %3 : vector<1x128xf32> to vector<16x128xf32>
    %5 = arith.addf %2, %4 : vector<16x128xf32>
    %6 = tpu.iota {dimensions = array<i32: 1>} : vector<16x128xi32>
    %c64_i32 = arith.constant 64 : i32
    %7 = vector.broadcast %c64_i32 : i32 to vector<16x128xi32>
    %8 = arith.cmpi slt, %6, %7 : vector<16x128xi32>
    %cst_5 = arith.constant 0.000000e+00 : f32
    %9 = vector.broadcast %cst_5 : f32 to vector<16x128xf32>
    %10 = arith.maximumf %5, %9 : vector<16x128xf32>
    %11 = arith.select %8, %10, %5 : vector<16x128xi1>, vector<16x128xf32>
    %12 = arith.truncf %11 : vector<16x128xf32> to vector<16x128xbf16>
    %c0_6 = arith.constant 0 : index
    %c0_7 = arith.constant 0 : index
    %13 = vector.load %arg4[%c0_6, %c0_7] : memref<128x128xbf16, #tpu.memory_space<vmem>>, vector<128x128xbf16>
    %cst_8 = arith.constant dense<0.000000e+00> : vector<16x128xf32>
    %14 = tpu.matmul %12, %13, %cst_8 {dimension_numbers = #tpu.dot_dimension_numbers<[1], [0], [0], [1], [0, 0, 1, 1], [], []>} : vector<16x128xbf16>, vector<128x128xbf16>, vector<16x128xf32> -> vector<16x128xf32>
    %c0_9 = arith.constant 0 : index
    %c0_10 = arith.constant 0 : index
    %15 = vector.load %arg5[%c0_9, %c0_10] : memref<1x128xf32, #tpu.memory_space<vmem>>, vector<1x128xf32>
    %16 = vector.broadcast %15 : vector<1x128xf32> to vector<16x128xf32>
    %17 = arith.addf %14, %16 : vector<16x128xf32>
    %18 = arith.mulf %17, %11 : vector<16x128xf32>
    %19 = arith.truncf %18 : vector<16x128xf32> to vector<16x128xbf16>
    %c0_11 = arith.constant 0 : index
    %c0_12 = arith.constant 0 : index
    %20 = vector.load %arg6[%c0_11, %c0_12] : memref<128x128xbf16, #tpu.memory_space<vmem>>, vector<128x128xbf16>
    %cst_13 = arith.constant dense<0.000000e+00> : vector<16x128xf32>
    %21 = tpu.matmul %19, %20, %cst_13 {dimension_numbers = #tpu.dot_dimension_numbers<[1], [0], [0], [1], [0, 0, 1, 1], [], []>} : vector<16x128xbf16>, vector<128x128xbf16>, vector<16x128xf32> -> vector<16x128xf32>
    %c0_14 = arith.constant 0 : index
    %c0_15 = arith.constant 0 : index
    %22 = vector.load %arg7[%c0_14, %c0_15] : memref<1x128xf32, #tpu.memory_space<vmem>>, vector<1x128xf32>
    %23 = vector.broadcast %22 : vector<1x128xf32> to vector<16x128xf32>
    %24 = arith.addf %21, %23 : vector<16x128xf32>
    %25 = arith.truncf %24 : vector<16x128xf32> to vector<16x128xbf16>
    %c0_16 = arith.constant 0 : index
    %c0_17 = arith.constant 0 : index
    %26 = vector.load %arg8[%c0_16, %c0_17] : memref<16x128xbf16, #tpu.memory_space<vmem>>, vector<16x128xbf16>
    tpu.vector_store %arg8[%c0_16, %c0_17], %25 {strides = array<i32>} : memref<16x128xbf16, #tpu.memory_space<vmem>>, vector<16x128xbf16>,
    return
  }
  func.func @transform_0(%arg0: i32) -> (i32, i32) {
    %c0_i32 = arith.constant 0 : i32
    %c0_i32_0 = arith.constant 0 : i32
    return %arg0, %c0_i32 : i32, i32
  }
  func.func @transform_1(%arg0: i32) -> (i32, i32) {
    %c0_i32 = arith.constant 0 : i32
    %c0_i32_0 = arith.constant 0 : i32
    %c0_i32_1 = arith.constant 0 : i32
    return %c0_i32, %c0_i32_0 : i32, i32
  }
  func.func @transform_2(%arg0: i32) -> (i32, i32) {
    %c0_i32 = arith.constant 0 : i32
    %c0_i32_0 = arith.constant 0 : i32
    %c0_i32_1 = arith.constant 0 : i32
    return %c0_i32, %c0_i32_0 : i32, i32
  }
  func.func @transform_3(%arg0: i32) -> (i32, i32) {
    %c0_i32 = arith.constant 0 : i32
    %c0_i32_0 = arith.constant 0 : i32
    %c0_i32_1 = arith.constant 0 : i32
    return %c0_i32, %c0_i32_0 : i32, i32
  }
  func.func @transform_4(%arg0: i32) -> (i32, i32) {
    %c0_i32 = arith.constant 0 : i32
    %c0_i32_0 = arith.constant 0 : i32
    %c0_i32_1 = arith.constant 0 : i32
    return %c0_i32, %c0_i32_0 : i32, i32
  }
  func.func @transform_5(%arg0: i32) -> (i32, i32) {
    %c0_i32 = arith.constant 0 : i32
    %c0_i32_0 = arith.constant 0 : i32
    %c0_i32_1 = arith.constant 0 : i32
    return %c0_i32, %c0_i32_0 : i32, i32
  }
  func.func @transform_6(%arg0: i32) -> (i32, i32) {
    %c0_i32 = arith.constant 0 : i32
    %c0_i32_0 = arith.constant 0 : i32
    %c0_i32_1 = arith.constant 0 : i32
    return %c0_i32, %c0_i32_0 : i32, i32
  }
  func.func @transform_7(%arg0: i32) -> (i32, i32) {
    %c0_i32 = arith.constant 0 : i32
    %c0_i32_0 = arith.constant 0 : i32
    return %arg0, %c0_i32 : i32, i32
  }
}

</mosaic_0001>

<bundles_post_ra>
// kernel: tpu_custom_call.1
= control target key start
LH: loop header
LB: loop body
LE: loop exit
PB: predicated region body
PF: predicated region fallthrough
CT: control target
= control target key end

     0   :  { %s1568_s0 = inlined_call_operand.hbm [shape: bf16[32,128], index: 0, kind: input, shape index: {}]   ;;  %s1569_s1 = inlined_call_operand.hbm [shape: bf16[128,128], index: 1, kind: input, shape index: {}]   ;;  %s1570_s2 = inlined_call_operand.vmem [shape: f32[1,128], index: 2, kind: input, shape index: {}]   ;;  %s1571_s3 = inlined_call_operand.hbm [shape: bf16[128,128], index: 3, kind: input, shape index: {}]   ;;  %s1572_s4 = inlined_call_operand.vmem [shape: f32[1,128], index: 4, kind: input, shape index: {}]   ;;  %s1573_s5 = inlined_call_operand.hbm [shape: bf16[128,128], index: 5, kind: input, shape index: {}]   ;;  %s1574_s6 = inlined_call_operand.vmem [shape: f32[1,128], index: 6, kind: input, shape index: {}]   ;;  %s1575_s7 = inlined_call_operand.hbm [shape: bf16[32,128], index: 7, kind: output, shape index: {}]  }
   0x1   :  { %1582 = sst [smem:[#allocation15_spill]] %s1569_s1 }
   0x2   :  { %12 = vsyncpa [#allocation3], 0 }
   0x3   :  { %14 = vsyncpa [#allocation3 + $0x1], 0 }
   0x4   :  { %15 = vsyncpa [#allocation6], 0 }
   0x5   :  { %16 = vsyncpa [#allocation9], 0 }
   0x6   :  { %17 = vsyncpa [#allocation4], 0 }
   0x7   :  { %19 = vsyncpa [#allocation4 + $0x1], 0  ;;  %s1310_s24 = smov 0   ;;  %s1312_s25 = smov 0  }
   0x8   :  { %s1314_s26 = smov 0   ;;  %s1316_s27 = smov 0  }
   0x9 LB: > { %s1331_s28 = sadd.s32 4294967295, %s1257_s27   ;;  %s825_s29 = sadd.s32 4294967294, %s1257_s27   ;;  %s1257_s27 = sphi %s1316_s27, %s1604_s27   ;;  %s1253_s26 = sphi %s1314_s26, %s1603_s26   ;;  %s1249_s25 = sphi %s1312_s25, %s1602_s25   ;;  %s1245_s24 = sphi %s1310_s24, %s1601_s24  }
   0xa   : > { %p45_p0 = scmp.ne.s32.totalorder %s1249_s25, %s1245_s24  ;;  %p1576_p1 = scmp.eq.s32.totalorder %s1331_s28, 0 }
   0xb   : > { %p195_p2 = scmp.eq.s32.totalorder %s1331_s28, 1  ;;  %p201_p3 = scmp.eq.s32.totalorder %s825_s29, 1 }
   0xc   : > { %p1340_p4 = por %p1576_p1, %p45_p0  ;;  %p826_p5 = scmp.ge.s32.totalorder %s1257_s27, 1 }
   0xd   : > { %p1345_p6 = por %p201_p3, %p45_p0  ;;  %p208_p7 = scmp.lt.s32.totalorder %s1257_s27, 3 }
   0xe   : > { %s1583_s30 = scalar_select %p1340_p4, 1, 0 }
   0xf   : > { %s1584_s8 = scalar_select %p1345_p6, 1, 0 }
  0x10   : > { %p1350_p8 = pnand %p826_p5, %p208_p7  ;;  %s1259_s10 = smov [#allocation5]  }
  0x11   : > { %s220_s11 = sshll.u32 %s1259_s10, 4  ;;  %s1260_s13 = smov [#allocation7]   ;;  %s221_s11 = int_to_ptr.vmem [resolvable:$true] %s220_s11 }
  0x12   : > { %s1585_s9 = scalar_select %p1350_p8, 1, 0 }
  0x13   : > { %p987_p9 = pneg %p1350_p8  ;;  %s236_s14 = sshll.u32 %s1260_s13, 4  ;;  %s237_s14 = int_to_ptr.vmem [resolvable:$true] %s236_s14 }
  0x14   : > { %s1261_s15 = smov [#allocation8]   ;;  %s1090_s17 = scalar_lea.vmem %s221_s11, 1024 }
  0x15   : > { %p1359_p11 = pnand %p987_p9, %p1576_p1  ;;  %s252_s16 = sshll.u32 %s1261_s15, 4  ;;  %s253_s16 = int_to_ptr.vmem [resolvable:$true] %s252_s16 }
  0x16   : > { %p1091_p13 = scmp.ne.s32.totalorder %s221_s11, %s1090_s17  ;;  %p1098_p5 = scmp.lt.s32.totalorder %s221_s11, %s221_s11 }
  0x17   : > { %p1081_p12 = pneg %p1359_p11  ;;  %p1099_p7 = scmp.lt.s32.totalorder %s1090_s17, %s1090_s17 }
  0x19   : > { %p1093_p0 = pnand %p1091_p13, %p1081_p12  ;;  %p1100_p9 = por %p1099_p7, %p1098_p5 }
  0x1b   : > { %p1094_p3 = pneg %p1093_p0 }
  0x1d   : > { %p1101_p10 = pnand %p1100_p9, %p1094_p3 }
  0x1f   : > { %1104 = shalt.err (!%p1101_p10)
}
  0x20   : > { %s1577_s18 = smov 64   ;;  %s1578_s19 = smov 4  }
  0x21   : > { %s1587_s1 = sld [smem:[#allocation15_spill]]  ;;  %s1116_s22 = scalar_lea.vmem %s237_s14, 1024 }
  0x22   : > { %p1117_p13 = scmp.ne.s32.totalorder %s237_s14, %s1116_s22  ;;  %p1124_p3 = scmp.lt.s32.totalorder %s237_s14, %s237_s14 }
  0x23   : > { %p1125_p10 = scmp.lt.s32.totalorder %s1116_s22, %s1116_s22 }
  0x24   : > { %p1119_p0 = pnand %p1117_p13, %p1081_p12 }
  0x25   : > { %p1126_p7 = por %p1125_p10, %p1124_p3 }
  0x26   : > { %p1120_p5 = pneg %p1119_p0 }
  0x27   : > { %990 = dma.hbm_to_vmem [thread:$0]  (!%p1359_p11), %s1587_s1, 1024, %s221_s11, [#allocation6], %s1577_s18, %s1577_s18, %s1578_s19  }
  0x28   : > { %p1127_p9 = pnand %p1126_p7, %p1120_p5 }
  0x2a   : > { %1130 = shalt.err (!%p1127_p9)
}
  0x2b   : > { %993 = dma.hbm_to_vmem [thread:$0]  (!%p1359_p11), %s1571_s3, 1024, %s237_s14, [#allocation6], %s1577_s18, %s1577_s18, %s1578_s19  }
  0x2c   : > { %s1142_s10 = scalar_lea.vmem %s253_s16, 1024  ;;  %p1150_p3 = scmp.lt.s32.totalorder %s253_s16, %s253_s16 }
  0x2d   : > { %p1143_p1 = scmp.ne.s32.totalorder %s253_s16, %s1142_s10  ;;  %p1151_p5 = scmp.lt.s32.totalorder %s1142_s10, %s1142_s10 }
  0x2f   : > { %p1145_p13 = pnand %p1143_p1, %p1081_p12  ;;  %p1152_p10 = por %p1151_p5, %p1150_p3 }
  0x31   : > { %p1146_p0 = pneg %p1145_p13 }
  0x33   : > { %p1153_p7 = pnand %p1152_p10, %p1146_p0 }
  0x35   : > { %1156 = shalt.err (!%p1153_p7)
}
  0x36   : > { %996 = dma.hbm_to_vmem [thread:$0]  (!%p1359_p11), %s1573_s5, 1024, %s253_s16, [#allocation9], %s1577_s18, %s1577_s18, %s1578_s19  }
  0x37   : > { %s1399_s14 = sadd.s32 1, %s1257_s27   ;;  %s32_s15 = sadd.s32 1, %s1253_s26 }
  0x38   : > { %s29_s12 = ssub.s32 %s1257_s27, %s1399_s14  ;;  %p39_p12 = scmp.ne.s32.totalorder %s1253_s26, %s1249_s25 }
  0x39   : > { %p30_p1 = scmp.eq.s32.totalorder %s29_s12, 0  ;;  %p40_p9 = scmp.eq.s32.totalorder %s1257_s27, 0 }
  0x3a   : > { %p1008_p13 = scmp.lt.s32.totalorder %s1257_s27, 2  ;;  %p1413_p3 = por %p195_p2, %p39_p12 }
  0x3b   : > { %s1409_s17 = scalar_select %p30_p1, %s1253_s26, %s32_s15  }
  0x3c   : > { %p41_p0 = por %p40_p9, %p39_p12  ;;  %s269_s21 = sand.u32 1, %s1253_s26  }
  0x3d   : > { %s1588_s20 = scalar_select %p1413_p3, 1, 0 }
  0x3e   : > { %s875_s22 = sshll.u32 %s1257_s27, 7  ;;  %s831_s16 = sshll.u32 %s269_s21, 3 }
  0x3f   : > { %s1422_s10 = scalar_lea.hbm %s1568_s0, %s875_s22  ;;  %s273_s11 = scalar_lea.vmem [#allocation2], %s831_s16 }
  0x40   : > { %s280_s13 = sshll.u32 %s273_s11, 4  ;;  %p1424_p11 = pnand %p1008_p13, %p41_p0  ;;  %s1428_s13 = int_to_ptr.vmem [resolvable:$true] %s280_s13 }
  0x41   : > { %s1430_s15 = scalar_lea.sflag [#allocation3], %s269_s21  ;;  %s1157_s18 = scalar_lea.hbm %s1422_s10, 128 }
  0x42   : > { %p1158_p2 = scmp.ne.s32.totalorder %s1422_s10, %s1157_s18  ;;  %p1159_p5 = pneg %p1424_p11 }
  0x43   : > { %s1162_s16 = scalar_lea.hbm %s1568_s0, 256  ;;  %p1163_p1 = scmp.lt.s32.totalorder %s1422_s10, %s1568_s0 }
  0x44   : > { %p1160_p10 = pnand %p1159_p5, %p1158_p2  ;;  %p1164_p12 = scmp.lt.s32.totalorder %s1162_s16, %s1157_s18 }
  0x46   : > { %p1161_p7 = pneg %p1160_p10  ;;  %p1165_p9 = por %p1164_p12, %p1163_p1 }
  0x48   : > { %p1166_p13 = pnand %p1165_p9, %p1161_p7 }
  0x4a   : > { %1169 = shalt.err (!%p1166_p13)
}
  0x4b   : > { %s1170_s21 = scalar_lea.vmem %s1428_s13, 128  ;;  %s1264_s19 = smov [#allocation2]  }
  0x4c   : > { %p1171_p0 = scmp.ne.s32.totalorder %s1428_s13, %s1170_s21  ;;  %s1175_s1 = sshll.u32 %s1264_s19, 4  ;;  %s1176_s1 = int_to_ptr.vmem [resolvable:$false] %s1175_s1 }
  0x4d   : > { %s1177_s22 = scalar_lea.vmem %s1176_s1, 256  ;;  %p1178_p10 = scmp.lt.s32.totalorder %s1428_s13, %s1176_s1 }
  0x4e   : > { %p1173_p6 = pnand %p1171_p0, %p1159_p5  ;;  %p1179_p3 = scmp.lt.s32.totalorder %s1177_s22, %s1170_s21 }
  0x50   : > { %p1174_p2 = pneg %p1173_p6  ;;  %p1180_p4 = por %p1179_p3, %p1178_p10 }
  0x52   : > { %p1181_p8 = pnand %p1180_p4, %p1174_p2 }
  0x54   : > { %1184 = shalt.err (!%p1181_p8)
}
  0x55   : > { %s1590_s18 = smov 4   ;;  %s1591_s23 = smov 64  }
  0x56   : > { %1000 = dma.hbm_to_vmem [thread:$0]  (!%p1424_p11), %s1422_s10, 128, %s1428_s13, %s1430_s15, %s1591_s23, %s1591_s23, %s1590_s18  }
  0x57   : > { %p1592_p6 = scmp.ne.s32.totalorder %s1585_s9, 0 }
  0x58   : > { %s1457_s19 = sand.u32 (!%p1592_p6), 1, %s1249_s25   ;;  %p1593_p4 = scmp.ne.s32.totalorder (!%p1592_p6), %s1583_s30, 0 }
  0x59   : > { %292 = sbr.rel (%p1592_p6) target bundleno = 758 (0x2f6), region = 48  ;;  %s835_s1 = sshll.u32 (!%p1592_p6), %s1457_s19, 3 }
  0x5a   : > { %s295_s16 = scalar_lea.sflag (!%p1592_p6), [#allocation3], %s1457_s19  ;;  %s1463_s12 = scalar_lea.vmem (!%p1592_p6), [#allocation2], %s835_s1 }
  0x5e   : > { %1228 = dma.done.wait (%p1593_p4), %s295_s16, 128  }
  0x5f   : > { %1230 = vsyncadd (%p1593_p4), %s295_s16, 4294967168  ;;  %p1594_p8 = scmp.eq.s32.totalorder %s1331_s28, 0 }
  0x61   : > { %1232 = dma.done.wait (%p1594_p8), [#allocation6], 2048   ;;  %p1595_p3 = pmov %p1594_p8 }
  0x63   : > { %1234 = vsyncadd (%p1595_p3), [#allocation6], 4294965248  ;;  %p1596_p11 = pmov %p1595_p3 }
  0x64   : > { %p1597_p5 = pmov %p1595_p3 }
  0x65   : > { %1236 = dma.done.wait (%p1596_p11), [#allocation9], 1024  }
  0x66   : > { %1238 = vsyncadd (%p1597_p5), [#allocation9], 4294966272  ;;  %v1265_v0 = vmov 0.0   ;;  %vm1266_vm0 = vmmov 0   ;;  %v1054_v1 = vld [vmem:[#allocation5 + $0x38] sm:$0xff]   ;;  %v1055_v2 = vld [vmem:[#allocation5 + $0x30] sm:$0xff]   ;;  %v464_v24 = vlaneseq }
  0x67   : > { %911 = vmatprep.subr.bf16.mxu0 %v1265_v0  ;;  %927 = vmatprep.mubr.msk.bf16.mxu0 %vm1266_vm0, %v1265_v0  ;;  %v1056_v3 = vld [vmem:[#allocation5 + $0x28] sm:$0xff]   ;;  %v1063_v4 = vld [vmem:[#allocation7 + $0x38] sm:$0xff]   ;;  %v1057_v5 = vld [vmem:[#allocation5 + $0x20] sm:$0xff]   ;;  %s340_s11 = scalar_lea.vmem [#allocation10], %s835_s1  ;;  %s878_s22 = sshll.u32 %s1331_s28, 7 }
  0x68   : > { %931 = vmatprep.subr.bf16.mxu1 %v1265_v0  ;;  %947 = vmatprep.mubr.msk.bf16.mxu1 %vm1266_vm0, %v1265_v0  ;;  %v1064_v6 = vld [vmem:[#allocation7 + $0x30] sm:$0xff]   ;;  %v1058_v7 = vld [vmem:[#allocation5 + $0x18] sm:$0xff]   ;;  %v1065_v8 = vld [vmem:[#allocation7 + $0x28] sm:$0xff]   ;;  %v465_v28 = vand.u32 127, %v464_v24  ;;  %s723_s21 = sshll.u32 %s340_s11, 4  ;;  %s1525_s16 = scalar_lea.hbm %s1575_s7, %s878_s22  ;;  %s1520_s21 = int_to_ptr.vmem [resolvable:$true] %s723_s21 }
  0x69   : > { %912 = vmatpush3.bf16.msra.mxu0 %v1054_v1  ;;  %932 = vmatpush3.bf16.msra.mxu1 %v1063_v4  ;;  %v1059_v9 = vld [vmem:[#allocation5 + $0x10] sm:$0xff]   ;;  %v1066_v10 = vld [vmem:[#allocation7 + $0x20] sm:$0xff]   ;;  %v1060_v11 = vld [vmem:[#allocation5 + $0x8] sm:$0xff]   ;;  %s1185_s1 = scalar_lea.vmem %s1520_s21, 128  ;;  %p1598_p1 = scmp.ne.s32.totalorder %s1588_s20, 0 }
  0x6a   : > { %913 = vmatprep.subr.bf16.mxu0 %v1265_v0  ;;  %933 = vmatprep.subr.bf16.mxu1 %v1265_v0  ;;  %v1067_v12 = vld [vmem:[#allocation7 + $0x18] sm:$0xff]   ;;  %v1061_v13 = vld [vmem:[#allocation5] sm:$0xff]   ;;  %v1068_v15 = vld [vmem:[#allocation7 + $0x10] sm:$0xff]   ;;  %vm466_vm1 = vcmp.lt.s32.totalorder %v465_v28, 64  ;;  %p1186_p7 = scmp.ne.s32.totalorder %s1520_s21, %s1185_s1  ;;  %s1267_s28 = smov [#allocation10]  }
  0x6b   : > { %v1062_v14 = vld [vmem:[%s1463_s12] sm:$0xff]   ;;  %v1069_v16 = vld [vmem:[#allocation7 + $0x8] sm:$0xff]   ;;  %v1070_v17 = vld [vmem:[#allocation7] sm:$0xff]   ;;  %s710_s12 = scalar_lea.sflag [#allocation4], %s1457_s19  ;;  %s1189_s30 = sshll.u32 %s1267_s28, 4  ;;  %s1190_s30 = int_to_ptr.vmem [resolvable:$false] %s1189_s30 }
  0x6c   : > { %v1071_v18 = vld [vmem:[#allocation8 + $0x38] sm:$0xff]   ;;  %v1072_v19 = vld [vmem:[#allocation8 + $0x30] sm:$0xff]   ;;  %v1073_v20 = vld [vmem:[#allocation8 + $0x28] sm:$0xff]   ;;  %p1187_p12 = pnand %p1186_p7, %p1598_p1  ;;  %s1191_s9 = scalar_lea.vmem %s1190_s30, 256 }
  0x6d   : > { %914 = vmatpush3.bf16.msra.mxu0 %v1055_v2  ;;  %934 = vmatpush3.bf16.msra.mxu1 %v1064_v6  ;;  %v1074_v21 = vld [vmem:[#allocation8 + $0x20] sm:$0xff]   ;;  %v1075_v22 = vld [vmem:[#allocation8 + $0x18] sm:$0xff]   ;;  %v840_v23 = vld [vmem:[%s1570_s2] ss:$0 sm:$0xff]  ;;  %p1192_p13 = scmp.lt.s32.totalorder %s1520_s21, %s1190_s30  ;;  %p1193_p0 = scmp.lt.s32.totalorder %s1191_s9, %s1185_s1 }
  0x6e   : > { %915 = vmatprep.subr.bf16.mxu0 %v1265_v0  ;;  %935 = vmatprep.subr.bf16.mxu1 %v1265_v0  ;;  %v1076_v37 = vld [vmem:[#allocation8 + $0x10] sm:$0xff]   ;;  %v1077_v38 = vld [vmem:[#allocation8 + $0x8] sm:$0xff]   ;;  %v1078_v39 = vld [vmem:[#allocation8] sm:$0xff]   ;;  %p1188_p9 = pneg %p1187_p12 }
  0x6f   : > { %v850_v40 = vld [vmem:[%s1572_s4] ss:$0 sm:$0xff]  ;;  %p1194_p2 = por %p1193_p0, %p1192_p13 }
  0x70   : > { %v859_v51 = vld [vmem:[%s1574_s6] ss:$0 sm:$0xff] }
  0x71   : > { %916 = vmatpush3.bf16.msra.mxu0 %v1056_v3  ;;  %936 = vmatpush3.bf16.msra.mxu1 %v1065_v8  ;;  %p1195_p10 = pnand %p1194_p2, %p1188_p9 }
  0x72   : > { %917 = vmatprep.subr.bf16.mxu0 %v1265_v0  ;;  %937 = vmatprep.subr.bf16.mxu1 %v1265_v0 }
  0x75   : > { %918 = vmatpush3.bf16.msra.mxu0 %v1057_v5  ;;  %938 = vmatpush3.bf16.msra.mxu1 %v1066_v10 }
  0x76   : > { %919 = vmatprep.subr.bf16.mxu0 %v1265_v0  ;;  %939 = vmatprep.subr.bf16.mxu1 %v1265_v0 }
  0x79   : > { %920 = vmatpush3.bf16.msra.mxu0 %v1058_v7  ;;  %940 = vmatpush3.bf16.msra.mxu1 %v1067_v12 }
  0x7a   : > { %921 = vmatprep.subr.bf16.mxu0 %v1265_v0  ;;  %941 = vmatprep.subr.bf16.mxu1 %v1265_v0 }
  0x7d   : > { %922 = vmatpush3.bf16.msra.mxu0 %v1059_v9  ;;  %942 = vmatpush3.bf16.msra.mxu1 %v1068_v15 }
  0x7e   : > { %923 = vmatprep.subr.bf16.mxu0 %v1265_v0  ;;  %943 = vmatprep.subr.bf16.mxu1 %v1265_v0 }
  0x81   : > { %924 = vmatpush3.bf16.msra.mxu0 %v1060_v11  ;;  %944 = vmatpush3.bf16.msra.mxu1 %v1069_v16 }
  0x82   : > { %925 = vmatprep.subr.bf16.mxu0 %v1265_v0  ;;  %945 = vmatprep.subr.bf16.mxu1 %v1265_v0 }
  0x85   : > { %926 = vmatpush3.bf16.msra.mxu0 %v1061_v13  ;;  %946 = vmatpush3.bf16.msra.mxu1 %v1070_v17 }
  0x86   : > { %951 = vmatprep.subr.bf16.mxu0 %v1265_v0 }
  0x88   : > { %928 = vmatmul.mubr.bf16.vlgmr.msra.gmra.mxu0 %v1062_v14 }
  0x89   : > { %967 = vmatprep.mubr.msk.bf16.mxu0 %vm1266_vm0, %v1265_v0  ;;  %952 = vmatpush3.bf16.msra.mxu0 %v1071_v18 }
  0x8a   : > { %953 = vmatprep.subr.bf16.mxu0 %v1265_v0 }
  0x8d   : > { %954 = vmatpush3.bf16.msra.mxu0 %v1072_v19 }
  0x8e   : > { %955 = vmatprep.subr.bf16.mxu0 %v1265_v0 }
  0x91   : > { %956 = vmatpush3.bf16.msra.mxu0 %v1073_v20 }
  0x92   : > { %957 = vmatprep.subr.bf16.mxu0 %v1265_v0 }
  0x95   : > { %958 = vmatpush3.bf16.msra.mxu0 %v1074_v21 }
  0x96   : > { %959 = vmatprep.subr.bf16.mxu0 %v1265_v0 }
  0x99   : > { %960 = vmatpush3.bf16.msra.mxu0 %v1075_v22 }
  0x9a   : > { %961 = vmatprep.subr.bf16.mxu0 %v1265_v0 }
  0x9d   : > { %962 = vmatpush3.bf16.msra.mxu0 %v1076_v37 }
  0x9e   : > { %963 = vmatprep.subr.bf16.mxu0 %v1265_v0 }
  0xa1   : > { %964 = vmatpush3.bf16.msra.mxu0 %v1077_v38 }
  0xa2   : > { %965 = vmatprep.subr.bf16.mxu0 %v1265_v0 }
  0xa5   : > { %966 = vmatpush3.bf16.msra.mxu0 %v1078_v39 }
 0x148   : > { %v457_v25 = vpop.f32.mrf.mxu0 }
 0x149   : > { %v458_v26 = vadd.f32 %v840_v23, %v457_v25 }
 0x14a   : > { %v929_v27 = vpop.f32.mrf.mxu0 }
 0x14b   : > { %v467_v30 = vmax.f32 %v458_v26, 0.0 }
 0x14c   : > { %v460_v29 = vpop.f32.mrf.mxu0 }
 0x14d   : > { %v461_v31 = vadd.f32 %v840_v23, %v460_v29  ;;  %v469_v34 = vsel %vm466_vm1, %v467_v30, %v458_v26 }
 0x14e   : > { %v930_v32 = vpop.f32.mrf.mxu0 }
 0x14f   : > { %v468_v33 = vmax.f32 %v461_v31, 0.0 }
 0x151   : > { %v470_v35 = vsel %vm466_vm1, %v468_v33, %v461_v31 }
 0x152   : > { %v471_v36 = vpack.c.bf16 %v470_v35, %v469_v34 }
 0x154   : > { %948 = vmatmul.mubr.bf16.vlgmr.msra.gmra.mxu1 %v471_v36 }
 0x214   : > { %v577_v41 = vpop.f32.mrf.mxu1 }
 0x215   : > { %v578_v43 = vadd.f32 %v850_v40, %v577_v41 }
 0x216   : > { %v949_v42 = vpop.f32.mrf.mxu1 }
 0x217   : > { %v584_v47 = vmul.f32 %v578_v43, %v469_v34 }
 0x218   : > { %v580_v44 = vpop.f32.mrf.mxu1 }
 0x219   : > { %v581_v45 = vadd.f32 %v850_v40, %v580_v44 }
 0x21a   : > { %v950_v46 = vpop.f32.mrf.mxu1 }
 0x21b   : > { %v585_v48 = vmul.f32 %v581_v45, %v470_v35 }
 0x21d   : > { %v586_v49 = vpack.c.bf16 %v585_v48, %v584_v47 }
 0x21f   : > { %968 = vmatmul.mubr.bf16.vlgmr.msra.gmra.mxu0 %v586_v49 }
 0x2df   : > { %v692_v50 = vpop.f32.mrf.mxu0 }
 0x2e0   : > { %v693_v54 = vadd.f32 %v859_v51, %v692_v50 }
 0x2e1   : > { %v969_v52 = vpop.f32.mrf.mxu0 }
 0x2e3   : > { %v695_v53 = vpop.f32.mrf.mxu0 }
 0x2e4   : > { %v696_v55 = vadd.f32 %v859_v51, %v695_v53 }
 0x2e5   : > { %v970_v56 = vpop.f32.mrf.mxu0 }
 0x2e6   : > { %v882_v57 = vpack.c.bf16 %v696_v55, %v693_v54 }
 0x2e8   : > { %883 = vst [vmem:[%s340_s11] sm:$0xff] %v882_v57  }
 0x2e9   : > { %1198 = shalt.err (!%p1195_p10)
}
 0x2ea   : > { %s1199_s10 = scalar_lea.hbm %s1525_s16, 128  ;;  %s1203_s29 = scalar_lea.hbm %s1575_s7, 256 }
 0x2eb   : > { %p1200_p6 = scmp.ne.s32.totalorder %s1525_s16, %s1199_s10  ;;  %p1204_p3 = scmp.lt.s32.totalorder %s1525_s16, %s1575_s7 }
 0x2ec   : > { %p1205_p11 = scmp.lt.s32.totalorder %s1203_s29, %s1199_s10 }
 0x2ed   : > { %p1201_p4 = pnand %p1200_p6, %p1598_p1 }
 0x2ee   : > { %p1206_p5 = por %p1205_p11, %p1204_p3 }
 0x2ef   : > { %p1202_p8 = pneg %p1201_p4 }
 0x2f1   : > { %p1207_p7 = pnand %p1206_p5, %p1202_p8 }
 0x2f3   : > { %1210 = shalt.err (!%p1207_p7)
}
 0x2f4   : > { %s1268_s18 = smov 64   ;;  %s1269_s23 = smov 4  }
 0x2f5   : > { %985 = dma.vmem_to_hbm [thread:$0]  (%p1598_p1), %s1520_s21, 128, %s1525_s16, %s710_s12, %s1268_s18, %s1268_s18, %s1269_s23  }
 0x2f6 PF: > { %s738_s1 = sand.u32 1, %s1245_s24   ;;  %p1599_p12 = scmp.ne.s32.totalorder %s1584_s8, 0 }
 0x2f7   : > { %p1600_p9 = scmp.ge.s32.totalorder %s1257_s27, 2  ;;  %s739_s28 = scalar_lea.sflag [#allocation4], %s738_s1 }
 0x2f9   : > { %p1002_p13 = pnand %p1600_p9, %p1599_p12 }
 0x2fb   : > { %p1003_p0 = pneg %p1002_p13 }
 0x2fd   : > { %1240 = dma.done.wait (%p1003_p0), %s739_s28, 128  }
 0x2fe   : > { %1242 = vsyncadd (%p1003_p0), %s739_s28, 4294967168  ;;  %p22_p2 = scmp.ge.s32.totalorder %s1399_s14, 4   ;;  %s1601_s24 = smov %s1249_s25 }
 0x2ff   : > { %s1602_s25 = smov %s1253_s26  ;;  %s1603_s26 = smov %s1409_s17 }
 0x300   : > { %s1604_s27 = smov %s1399_s14  ;;  %24 = sbr.rel (!%p22_p2) target bundleno = 9 (0x9), region = 105 }
 0x305   :  { %744 = vsyncpa [#allocation3], 1 }
 0x306   :  { %746 = vsyncpa [#allocation3 + $0x1], 1 }
 0x307   :  { %747 = vsyncpa [#allocation6], 1 }
 0x308   :  { %748 = vsyncpa [#allocation9], 1 }
 0x309   :  { %749 = vsyncpa [#allocation4], 1 }
 0x30a   :  { %751 = vsyncpa [#allocation4 + $0x1], 1 }

</bundles_post_ra>
